<compile_context>
chip_gen: v6e
topology: v6e:2x2x1
jax: 0.10.0
libtpu: 0.0.40
codegen_flags: <defaults>
</compile_context>

<pallas_src>
import functools

import jax
import jax.numpy as jnp
from jax.experimental import pallas as pl
from jax.experimental.pallas import tpu as pltpu


# ----------------------------- Pallas kernel --------------------------------
def simple_nn_kernel(x_ref, w1_ref, b1_ref, w2_ref, b2_ref, w3_ref, b3_ref, o_ref):
    def leaky_relu(h):
        return jnp.where(h > 0, h, 0.01 * h)

    x = x_ref[...]                                                      # (TB, Fp)

    # block 1: (BN1 + bias folded into w1/b1) -> leaky_relu
    h = jnp.dot(x, w1_ref[...], preferred_element_type=jnp.float32) + b1_ref[...]
    h = leaky_relu(h).astype(w2_ref.dtype)                              # (TB, Hp)

    # block 2
    h = jnp.dot(h, w2_ref[...], preferred_element_type=jnp.float32) + b2_ref[...]
    h = leaky_relu(h).astype(w3_ref.dtype)                              # (TB, Hp)

    # block 3 (no activation)
    o_ref[...] = (
        jnp.dot(h, w3_ref[...], preferred_element_type=jnp.float32) + b3_ref[...]
    ).astype(o_ref.dtype)                                               # (TB, Tp)


# ------------------------------ JAX wrapper ----------------------------------
def _round_up(n, m):
    return ((n + m - 1) // m) * m


def fold_batchnorm(gamma, beta, running_mean, running_var, eps=1e-5):
    scale = gamma / jnp.sqrt(running_var + eps)
    shift = beta - running_mean * scale
    return scale, shift                                     # (C,), (C,)


def weight_norm(v, g):
    # PyTorch nn.utils.weight_norm on Linear, dim=0: per output-row norm.
    # v: (out, in), g: (out,)
    norm = jnp.sqrt(jnp.sum(v * v, axis=1, keepdims=True))
    return (g[:, None] / norm) * v                           # (out, in)


def _pad2(a, rows, cols):
    return jnp.pad(a, ((0, rows - a.shape[0]), (0, cols - a.shape[1])))


@functools.partial(jax.jit, static_argnames=("batch_tile",))
def simple_nn_forward(x, params, *, batch_tile=256):
    compute_dtype = jnp.bfloat16
    B, F = x.shape
    H = params["w1"].shape[0]
    T = params["w3"].shape[0]

    # ---- fold BN + bias into the weights (all in f32) ----
    s1, t1 = fold_batchnorm(params["bn1_g"], params["bn1_b"],
                            params["bn1_rm"], params["bn1_rv"])
    s2, t2 = fold_batchnorm(params["bn2_g"], params["bn2_b"],
                            params["bn2_rm"], params["bn2_rv"])
    s3, t3 = fold_batchnorm(params["bn3_g"], params["bn3_b"],
                            params["bn3_rm"], params["bn3_rv"])

    w1 = weight_norm(params["w1"], params["w1_g"]).T         # (F, H)
    w2 = params["w2"].T                                      # (H, H)
    w3 = weight_norm(params["w3"], params["w3_g"]).T         # (H, T)

    w1_eff = s1[:, None] * w1                                # (F, H)
    b1_eff = t1 @ w1 + params["b1"]                          # (H,)
    w2_eff = s2[:, None] * w2                                # (H, H)
    b2_eff = t2 @ w2 + params["b2"]                          # (H,)
    w3_eff = s3[:, None] * w3                                # (H, T)
    b3_eff = t3 @ w3 + params["b3"]                          # (T,)

    # ---- pad to lane-dense shapes (multiples of 128) & tile the batch ----
    Fp = _round_up(F, 128)
    Hp = _round_up(H, 128)
    Tp = _round_up(T, 128)
    TB = min(batch_tile, _round_up(B, 8))
    Bp = _round_up(B, TB)

    xp = jnp.pad(x, ((0, Bp - B), (0, Fp - F))).astype(compute_dtype)
    w1p = _pad2(w1_eff, Fp, Hp).astype(compute_dtype)
    w2p = _pad2(w2_eff, Hp, Hp).astype(compute_dtype)
    w3p = _pad2(w3_eff, Hp, Tp).astype(compute_dtype)
    b1p = jnp.pad(b1_eff, (0, Hp - H))[None, :].astype(jnp.float32)   # (1, Hp)
    b2p = jnp.pad(b2_eff, (0, Hp - H))[None, :].astype(jnp.float32)   # (1, Hp)
    b3p = jnp.pad(b3_eff, (0, Tp - T))[None, :].astype(jnp.float32)   # (1, Tp)

    grid = (Bp // TB,)

    # ---- VMEM budget: weights + double-buffered x/out tiles + activations ----
    wd = jnp.dtype(compute_dtype).itemsize
    weight_bytes = (Fp * Hp + Hp * Hp + Hp * Tp) * wd + (2 * Hp + Tp) * 4
    tile_bytes = 2 * TB * Fp * wd + 2 * TB * Tp * 4          # 2x-buffered in/out tiles
    act_bytes = 3 * TB * Hp * 4                              # f32 intermediates
    vmem_budget = int(min(max(2 * (weight_bytes + tile_bytes + act_bytes), 16 << 20),
                          48 << 20))

    resident = lambda i: (0, 0)                              # weights/biases stay in VMEM
    out = pl.pallas_call(
        simple_nn_kernel,
        out_shape=jax.ShapeDtypeStruct((Bp, Tp), jnp.float32),
        grid=grid,
        in_specs=[
            pl.BlockSpec((TB, Fp), lambda i: (i, 0)),        # x tile
            pl.BlockSpec((Fp, Hp), resident),                # w1
            pl.BlockSpec((1, Hp), resident),                 # b1
            pl.BlockSpec((Hp, Hp), resident),                # w2
            pl.BlockSpec((1, Hp), resident),                 # b2
            pl.BlockSpec((Hp, Tp), resident),                # w3
            pl.BlockSpec((1, Tp), resident),                 # b3
        ],
        out_specs=pl.BlockSpec((TB, Tp), lambda i: (i, 0)),
        compiler_params=pltpu.CompilerParams(
            dimension_semantics=("parallel",),
            vmem_limit_bytes=vmem_budget,
        ),
    )(xp, w1p, b1p, w2p, b2p, w3p, b3p)

    return out[:B, :T]


# ------------------------- pure-JAX reference (f32) ---------------------------
def simple_nn_reference(x, params):
    def lrelu(h):
        return jnp.where(h > 0, h, 0.01 * h)

    s1, t1 = fold_batchnorm(params["bn1_g"], params["bn1_b"],
                            params["bn1_rm"], params["bn1_rv"])
    s2, t2 = fold_batchnorm(params["bn2_g"], params["bn2_b"],
                            params["bn2_rm"], params["bn2_rv"])
    s3, t3 = fold_batchnorm(params["bn3_g"], params["bn3_b"],
                            params["bn3_rm"], params["bn3_rv"])
    w1 = weight_norm(params["w1"], params["w1_g"]).T
    w2 = params["w2"].T
    w3 = weight_norm(params["w3"], params["w3_g"]).T
    h = lrelu((x * s1 + t1) @ w1 + params["b1"])
    h = lrelu((h * s2 + t2) @ w2 + params["b2"])
    return (h * s3 + t3) @ w3 + params["b3"]


# ------------------------------ Param init -----------------------------------
def init_params(key, num_features, hidden_size, num_targets):
    ks = jax.random.split(key, 8)
    p = {}
    # BatchNorm1d(num_features)
    p["bn1_g"] = 1.0 + 0.1 * jax.random.normal(ks[0], (num_features,), jnp.float32)
    p["bn1_b"] = 0.05 * jax.random.normal(ks[1], (num_features,), jnp.float32)
    p["bn1_rm"] = 0.1 * jax.random.normal(ks[2], (num_features,), jnp.float32)
    p["bn1_rv"] = jnp.abs(1.0 + 0.1 * jax.random.normal(ks[3], (num_features,), jnp.float32))
    # dense1 = weight_norm(Linear(F, H))
    p["w1"] = 0.1 * jax.random.normal(ks[4], (hidden_size, num_features), jnp.float32)
    p["w1_g"] = jnp.sqrt(jnp.sum(p["w1"] ** 2, axis=1))   # g init = ||v|| (PyTorch default)
    p["b1"] = 0.01 * jnp.arange(hidden_size, dtype=jnp.float32)
    # BatchNorm1d(hidden_size) x2
    for i, kk in zip((2, 3), jax.random.split(ks[5], 2)):
        kA, kB, kC, kD = jax.random.split(kk, 4)
        p[f"bn{i}_g"] = 1.0 + 0.1 * jax.random.normal(kA, (hidden_size,), jnp.float32)
        p[f"bn{i}_b"] = 0.05 * jax.random.normal(kB, (hidden_size,), jnp.float32)
        p[f"bn{i}_rm"] = 0.1 * jax.random.normal(kC, (hidden_size,), jnp.float32)
        p[f"bn{i}_rv"] = jnp.abs(1.0 + 0.1 * jax.random.normal(kD, (hidden_size,), jnp.float32))
    # dense2 = Linear(H, H)
    p["w2"] = 0.1 * jax.random.normal(ks[6], (hidden_size, hidden_size), jnp.float32)
    p["b2"] = 0.01 * jnp.arange(hidden_size, dtype=jnp.float32)
    # dense3 = weight_norm(Linear(H, T))
    p["w3"] = 0.1 * jax.random.normal(ks[7], (num_targets, hidden_size), jnp.float32)
    p["w3_g"] = jnp.sqrt(jnp.sum(p["w3"] ** 2, axis=1))
    p["b3"] = 0.01 * jnp.arange(num_targets, dtype=jnp.float32)
    return p


if __name__ == "__main__":
    B, F, H, T = 8, 64, 32, 16
    key = jax.random.PRNGKey(0)
    kx, kp = jax.random.split(key)
    x = jax.random.normal(kx, (B, F), jnp.float32)
    params = init_params(kp, F, H, T)

    out = simple_nn_forward(x, params)
    out = jax.block_until_ready(out)
    assert out.shape == (B, T) and out.dtype == jnp.float32

    # sanity-check vs f32 reference (bf16 matmuls, so loose tolerance)
    ref = simple_nn_reference(x, params)
    max_err = float(jnp.max(jnp.abs(out - ref)))
    assert max_err < 0.1, f"max abs err {max_err}"

    print("KERNEL_OK")
</pallas_src>

<mosaic_0001>
module attributes {stable_mosaic.version = 11 : i64} {
  func.func @simple_nn_kernel(%arg0: i32, %arg1: memref<8x128xbf16, #tpu.memory_space<vmem>>, %arg2: memref<128x128xbf16, #tpu.memory_space<vmem>>, %arg3: memref<1x128xf32, #tpu.memory_space<vmem>>, %arg4: memref<128x128xbf16, #tpu.memory_space<vmem>>, %arg5: memref<1x128xf32, #tpu.memory_space<vmem>>, %arg6: memref<128x128xbf16, #tpu.memory_space<vmem>>, %arg7: memref<1x128xf32, #tpu.memory_space<vmem>>, %arg8: memref<8x128xf32, #tpu.memory_space<vmem>>) attributes {dimension_semantics = [#tpu.dimension_semantics<parallel>], iteration_bounds = array<i64: 1>, scalar_prefetch = 0 : i64, scratch_operands = 0 : i64, tpu.core_type = #tpu.core_type<tc>, window_params = [{transform_indices = @transform_0, window_bounds = array<i64: 8, 128>}, {pipeline_mode = #tpu.pipeline_mode<synchronous>, transform_indices = @transform_1, window_bounds = array<i64: 128, 128>}, {pipeline_mode = #tpu.pipeline_mode<synchronous>, transform_indices = @transform_2, window_bounds = array<i64: 1, 128>}, {pipeline_mode = #tpu.pipeline_mode<synchronous>, transform_indices = @transform_3, window_bounds = array<i64: 128, 128>}, {pipeline_mode = #tpu.pipeline_mode<synchronous>, transform_indices = @transform_4, window_bounds = array<i64: 1, 128>}, {pipeline_mode = #tpu.pipeline_mode<synchronous>, transform_indices = @transform_5, window_bounds = array<i64: 128, 128>}, {pipeline_mode = #tpu.pipeline_mode<synchronous>, transform_indices = @transform_6, window_bounds = array<i64: 1, 128>}, {transform_indices = @transform_7, window_bounds = array<i64: 8, 128>}]} {
    %c0 = arith.constant 0 : index
    %c0_0 = arith.constant 0 : index
    %0 = vector.load %arg1[%c0, %c0_0] : memref<8x128xbf16, #tpu.memory_space<vmem>>, vector<8x128xbf16>
    %c0_1 = arith.constant 0 : index
    %c0_2 = arith.constant 0 : index
    %1 = vector.load %arg2[%c0_1, %c0_2] : memref<128x128xbf16, #tpu.memory_space<vmem>>, vector<128x128xbf16>
    %cst = arith.constant dense<0.000000e+00> : vector<8x128xf32>
    %2 = tpu.matmul %0, %1, %cst {dimension_numbers = #tpu.dot_dimension_numbers<[1], [0], [0], [1], [0, 0, 1, 1], [], []>} : vector<8x128xbf16>, vector<128x128xbf16>, vector<8x128xf32> -> vector<8x128xf32>
    %c0_3 = arith.constant 0 : index
    %c0_4 = arith.constant 0 : index
    %3 = vector.load %arg3[%c0_3, %c0_4] : memref<1x128xf32, #tpu.memory_space<vmem>>, vector<1x128xf32>
    %4 = vector.broadcast %3 : vector<1x128xf32> to vector<8x128xf32>
    %5 = arith.addf %2, %4 : vector<8x128xf32>
    %cst_5 = arith.constant 0.000000e+00 : f32
    %6 = vector.broadcast %cst_5 : f32 to vector<8x128xf32>
    %7 = arith.cmpf ogt, %5, %6 : vector<8x128xf32>
    %cst_6 = arith.constant 0.00999999977 : f32
    %8 = vector.broadcast %cst_6 : f32 to vector<8x128xf32>
    %9 = arith.mulf %8, %5 : vector<8x128xf32>
    %10 = arith.select %7, %5, %9 : vector<8x128xi1>, vector<8x128xf32>
    %11 = arith.truncf %10 : vector<8x128xf32> to vector<8x128xbf16>
    %c0_7 = arith.constant 0 : index
    %c0_8 = arith.constant 0 : index
    %12 = vector.load %arg4[%c0_7, %c0_8] : memref<128x128xbf16, #tpu.memory_space<vmem>>, vector<128x128xbf16>
    %cst_9 = arith.constant dense<0.000000e+00> : vector<8x128xf32>
    %13 = tpu.matmul %11, %12, %cst_9 {dimension_numbers = #tpu.dot_dimension_numbers<[1], [0], [0], [1], [0, 0, 1, 1], [], []>} : vector<8x128xbf16>, vector<128x128xbf16>, vector<8x128xf32> -> vector<8x128xf32>
    %c0_10 = arith.constant 0 : index
    %c0_11 = arith.constant 0 : index
    %14 = vector.load %arg5[%c0_10, %c0_11] : memref<1x128xf32, #tpu.memory_space<vmem>>, vector<1x128xf32>
    %15 = vector.broadcast %14 : vector<1x128xf32> to vector<8x128xf32>
    %16 = arith.addf %13, %15 : vector<8x128xf32>
    %cst_12 = arith.constant 0.000000e+00 : f32
    %17 = vector.broadcast %cst_12 : f32 to vector<8x128xf32>
    %18 = arith.cmpf ogt, %16, %17 : vector<8x128xf32>
    %cst_13 = arith.constant 0.00999999977 : f32
    %19 = vector.broadcast %cst_13 : f32 to vector<8x128xf32>
    %20 = arith.mulf %19, %16 : vector<8x128xf32>
    %21 = arith.select %18, %16, %20 : vector<8x128xi1>, vector<8x128xf32>
    %22 = arith.truncf %21 : vector<8x128xf32> to vector<8x128xbf16>
    %c0_14 = arith.constant 0 : index
    %c0_15 = arith.constant 0 : index
    %23 = vector.load %arg6[%c0_14, %c0_15] : memref<128x128xbf16, #tpu.memory_space<vmem>>, vector<128x128xbf16>
    %cst_16 = arith.constant dense<0.000000e+00> : vector<8x128xf32>
    %24 = tpu.matmul %22, %23, %cst_16 {dimension_numbers = #tpu.dot_dimension_numbers<[1], [0], [0], [1], [0, 0, 1, 1], [], []>} : vector<8x128xbf16>, vector<128x128xbf16>, vector<8x128xf32> -> vector<8x128xf32>
    %c0_17 = arith.constant 0 : index
    %c0_18 = arith.constant 0 : index
    %25 = vector.load %arg7[%c0_17, %c0_18] : memref<1x128xf32, #tpu.memory_space<vmem>>, vector<1x128xf32>
    %26 = vector.broadcast %25 : vector<1x128xf32> to vector<8x128xf32>
    %27 = arith.addf %24, %26 : vector<8x128xf32>
    %c0_19 = arith.constant 0 : index
    %c0_20 = arith.constant 0 : index
    %28 = vector.load %arg8[%c0_19, %c0_20] : memref<8x128xf32, #tpu.memory_space<vmem>>, vector<8x128xf32>
    tpu.vector_store %arg8[%c0_19, %c0_20], %27 {strides = array<i32>} : memref<8x128xf32, #tpu.memory_space<vmem>>, vector<8x128xf32>,
    return
  }
  func.func @transform_0(%arg0: i32) -> (i32, i32) {
    %c0_i32 = arith.constant 0 : i32
    %c0_i32_0 = arith.constant 0 : i32
    return %arg0, %c0_i32 : i32, i32
  }
  func.func @transform_1(%arg0: i32) -> (i32, i32) {
    %c0_i32 = arith.constant 0 : i32
    %c0_i32_0 = arith.constant 0 : i32
    %c0_i32_1 = arith.constant 0 : i32
    return %c0_i32, %c0_i32_0 : i32, i32
  }
  func.func @transform_2(%arg0: i32) -> (i32, i32) {
    %c0_i32 = arith.constant 0 : i32
    %c0_i32_0 = arith.constant 0 : i32
    %c0_i32_1 = arith.constant 0 : i32
    return %c0_i32, %c0_i32_0 : i32, i32
  }
  func.func @transform_3(%arg0: i32) -> (i32, i32) {
    %c0_i32 = arith.constant 0 : i32
    %c0_i32_0 = arith.constant 0 : i32
    %c0_i32_1 = arith.constant 0 : i32
    return %c0_i32, %c0_i32_0 : i32, i32
  }
  func.func @transform_4(%arg0: i32) -> (i32, i32) {
    %c0_i32 = arith.constant 0 : i32
    %c0_i32_0 = arith.constant 0 : i32
    %c0_i32_1 = arith.constant 0 : i32
    return %c0_i32, %c0_i32_0 : i32, i32
  }
  func.func @transform_5(%arg0: i32) -> (i32, i32) {
    %c0_i32 = arith.constant 0 : i32
    %c0_i32_0 = arith.constant 0 : i32
    %c0_i32_1 = arith.constant 0 : i32
    return %c0_i32, %c0_i32_0 : i32, i32
  }
  func.func @transform_6(%arg0: i32) -> (i32, i32) {
    %c0_i32 = arith.constant 0 : i32
    %c0_i32_0 = arith.constant 0 : i32
    %c0_i32_1 = arith.constant 0 : i32
    return %c0_i32, %c0_i32_0 : i32, i32
  }
  func.func @transform_7(%arg0: i32) -> (i32, i32) {
    %c0_i32 = arith.constant 0 : i32
    %c0_i32_0 = arith.constant 0 : i32
    return %arg0, %c0_i32 : i32, i32
  }
}

</mosaic_0001>

<bundles_post_ra>
// kernel: simple_nn_forward.1
= control target key start
LH: loop header
LB: loop body
LE: loop exit
PB: predicated region body
PF: predicated region fallthrough
CT: control target
= control target key end

     0   :  { %v548_v1 = vmov 0.0   ;;  %vm549_vm0 = vmmov 0   ;;  %s708_s0 = inlined_call_operand.vmem [shape: bf16[8,128], index: 0, kind: input, shape index: {}]   ;;  %s709_s1 = inlined_call_operand.vmem [shape: bf16[128,128], index: 1, kind: input, shape index: {}]   ;;  %s710_s2 = inlined_call_operand.vmem [shape: f32[1,128], index: 2, kind: input, shape index: {}]   ;;  %s711_s3 = inlined_call_operand.vmem [shape: bf16[128,128], index: 3, kind: input, shape index: {}]   ;;  %s712_s4 = inlined_call_operand.vmem [shape: f32[1,128], index: 4, kind: input, shape index: {}]   ;;  %s713_s5 = inlined_call_operand.vmem [shape: bf16[128,128], index: 5, kind: input, shape index: {}]   ;;  %s714_s6 = inlined_call_operand.vmem [shape: f32[1,128], index: 6, kind: input, shape index: {}]   ;;  %s715_s7 = inlined_call_operand.hbm [shape: f32[8,128], index: 7, kind: output, shape index: {}]  }
   0x1   :  { %v502_v0 = vld [vmem:[%s709_s1 + $0x38] sm:$0xff]   ;;  %439 = vmatprep.subr.bf16.mxu0 %v548_v1  ;;  %459 = vmatprep.subr.bf16.mxu1 %v548_v1  ;;  %v503_v2 = vld [vmem:[%s709_s1 + $0x30] sm:$0xff]   ;;  %v504_v3 = vld [vmem:[%s709_s1 + $0x28] sm:$0xff]  }
   0x2   :  { %440 = vmatpush3.bf16.msra.mxu0 %v502_v0  ;;  %455 = vmatprep.mubr.msk.bf16.mxu0 %vm549_vm0, %v548_v1  ;;  %v510_v4 = vld [vmem:[%s711_s3 + $0x38] sm:$0xff]   ;;  %v505_v5 = vld [vmem:[%s709_s1 + $0x20] sm:$0xff]   ;;  %v511_v6 = vld [vmem:[%s711_s3 + $0x30] sm:$0xff]  }
   0x3   :  { %441 = vmatprep.subr.bf16.mxu0 %v548_v1  ;;  %475 = vmatprep.mubr.msk.bf16.mxu1 %vm549_vm0, %v548_v1  ;;  %v506_v7 = vld [vmem:[%s709_s1 + $0x18] sm:$0xff]   ;;  %v512_v8 = vld [vmem:[%s711_s3 + $0x28] sm:$0xff]   ;;  %v507_v9 = vld [vmem:[%s709_s1 + $0x10] sm:$0xff]  }
   0x4   :  { %460 = vmatpush3.bf16.msra.mxu1 %v510_v4  ;;  %v513_v10 = vld [vmem:[%s711_s3 + $0x20] sm:$0xff]  }
   0x5   :  { %461 = vmatprep.subr.bf16.mxu1 %v548_v1 }
   0x6   :  { %442 = vmatpush3.bf16.msra.mxu0 %v503_v2 }
   0x7   :  { %443 = vmatprep.subr.bf16.mxu0 %v548_v1 }
   0x8   :  { %462 = vmatpush3.bf16.msra.mxu1 %v511_v6 }
   0x9   :  { %463 = vmatprep.subr.bf16.mxu1 %v548_v1 }
   0xa   :  { %444 = vmatpush3.bf16.msra.mxu0 %v504_v3 }
   0xb   :  { %445 = vmatprep.subr.bf16.mxu0 %v548_v1 }
   0xc   :  { %464 = vmatpush3.bf16.msra.mxu1 %v512_v8 }
   0xd   :  { %465 = vmatprep.subr.bf16.mxu1 %v548_v1 }
   0xe   :  { %446 = vmatpush3.bf16.msra.mxu0 %v505_v5 }
   0xf   :  { %447 = vmatprep.subr.bf16.mxu0 %v548_v1 }
  0x12   :  { %448 = vmatpush3.bf16.msra.mxu0 %v506_v7 }
  0x13   :  { %449 = vmatprep.subr.bf16.mxu0 %v548_v1 }
  0x14   :  { %12 = vsyncpa [#allocation3], 0  ;;  %v508_v11 = vld [vmem:[%s709_s1 + $0x8] sm:$0xff]   ;;  %466 = vmatpush3.bf16.msra.mxu1 %v513_v10  ;;  %v514_v12 = vld [vmem:[%s711_s3 + $0x18] sm:$0xff]  }
  0x15   :  { %467 = vmatprep.subr.bf16.mxu1 %v548_v1  ;;  %v509_v13 = vld [vmem:[%s709_s1] sm:$0xff]   ;;  %v515_v14 = vld [vmem:[%s711_s3 + $0x10] sm:$0xff]   ;;  %v516_v16 = vld [vmem:[%s711_s3 + $0x8] sm:$0xff]  }
  0x16   :  { %450 = vmatpush3.bf16.msra.mxu0 %v507_v9  ;;  %v28_v15 = vld [vmem:[%s708_s0] sm:$0xf]  ;;  %v518_v18 = vld [vmem:[%s713_s5 + $0x38] sm:$0xff]   ;;  %v519_v19 = vld [vmem:[%s713_s5 + $0x30] sm:$0xff]  }
  0x17   :  { %451 = vmatprep.subr.bf16.mxu0 %v548_v1  ;;  %v517_v17 = vld [vmem:[%s711_s3] sm:$0xff]   ;;  %v520_v20 = vld [vmem:[%s713_s5 + $0x28] sm:$0xff]   ;;  %v522_v22 = vld [vmem:[%s713_s5 + $0x18] sm:$0xff]  }
  0x18   :  { %468 = vmatpush3.bf16.msra.mxu1 %v514_v12  ;;  %v521_v21 = vld [vmem:[%s713_s5 + $0x20] sm:$0xff]   ;;  %v523_v23 = vld [vmem:[%s713_s5 + $0x10] sm:$0xff]   ;;  %v524_v33 = vld [vmem:[%s713_s5 + $0x8] sm:$0xff]  }
  0x19   :  { %469 = vmatprep.subr.bf16.mxu1 %v548_v1  ;;  %v385_v24 = vld [vmem:[%s710_s2] ss:$0 sm:$0xff] }
  0x1a   :  { %452 = vmatpush3.bf16.msra.mxu0 %v508_v11  ;;  %v525_v34 = vld [vmem:[%s713_s5] sm:$0xff]   ;;  %s550_s5 = smov [#allocation2]  }
  0x1b   :  { %453 = vmatprep.subr.bf16.mxu0 %v548_v1  ;;  %v394_v35 = vld [vmem:[%s712_s4] ss:$0 sm:$0xff]  ;;  %s377_s30 = sshll.u32 %s550_s5, 4  ;;  %s378_s30 = int_to_ptr.vmem [resolvable:$true] %s377_s30 }
  0x1c   :  { %470 = vmatpush3.bf16.msra.mxu1 %v515_v14  ;;  %v403_v44 = vld [vmem:[%s714_s6] ss:$0 sm:$0xff]  ;;  %s526_s4 = scalar_lea.vmem %s378_s30, 128  ;;  %p531_p1 = scmp.lt.s32.totalorder %s378_s30, %s378_s30 }
  0x1d   :  { %471 = vmatprep.subr.bf16.mxu1 %v548_v1  ;;  %p527_p0 = scmp.ne.s32.totalorder %s378_s30, %s526_s4  ;;  %p532_p2 = scmp.lt.s32.totalorder %s526_s4, %s526_s4 }
  0x1e   :  { %454 = vmatpush3.bf16.msra.mxu0 %v509_v13 }
  0x1f   :  { %479 = vmatprep.subr.bf16.mxu0 %v548_v1  ;;  %p533_p3 = por %p532_p2, %p531_p1 }
  0x20   :  { %472 = vmatpush3.bf16.msra.mxu1 %v516_v16 }
  0x21   :  { %456 = vmatmul.mubr.bf16.vlgmr.msra.gmra.mxu0 %v28_v15  ;;  %473 = vmatprep.subr.bf16.mxu1 %v548_v1  ;;  %p534_p4 = pnand %p533_p3, %p527_p0 }
  0x22   :  { %495 = vmatprep.mubr.msk.bf16.mxu0 %vm549_vm0, %v548_v1  ;;  %480 = vmatpush3.bf16.msra.mxu0 %v518_v18 }
  0x23   :  { %481 = vmatprep.subr.bf16.mxu0 %v548_v1 }
  0x24   :  { %474 = vmatpush3.bf16.msra.mxu1 %v517_v17 }
  0x26   :  { %482 = vmatpush3.bf16.msra.mxu0 %v519_v19 }
  0x27   :  { %483 = vmatprep.subr.bf16.mxu0 %v548_v1 }
  0x2a   :  { %484 = vmatpush3.bf16.msra.mxu0 %v520_v20 }
  0x2b   :  { %485 = vmatprep.subr.bf16.mxu0 %v548_v1 }
  0x2e   :  { %486 = vmatpush3.bf16.msra.mxu0 %v521_v21 }
  0x2f   :  { %487 = vmatprep.subr.bf16.mxu0 %v548_v1 }
  0x32   :  { %488 = vmatpush3.bf16.msra.mxu0 %v522_v22 }
  0x33   :  { %489 = vmatprep.subr.bf16.mxu0 %v548_v1 }
  0x36   :  { %490 = vmatpush3.bf16.msra.mxu0 %v523_v23 }
  0x37   :  { %491 = vmatprep.subr.bf16.mxu0 %v548_v1 }
  0x3a   :  { %492 = vmatpush3.bf16.msra.mxu0 %v524_v33 }
  0x3b   :  { %493 = vmatprep.subr.bf16.mxu0 %v548_v1 }
  0x3e   :  { %494 = vmatpush3.bf16.msra.mxu0 %v525_v34 }
  0xe1   :  { %v134_v25 = vpop.f32.mrf.mxu0 }
  0xe2   :  { %v135_v26 = vadd.f32 %v385_v24, %v134_v25 }
  0xe3   :  { %v457_v27 = vpop.f32.mrf.mxu0 }
  0xe4   :  { %vm140_vm1 = vcmp.gt.f32.partialorder %v135_v26, 0.0  ;;  %v141_v28 = vmul.f32 0.01, %v135_v26 }
  0xe5   :  { %v137_v29 = vpop.f32.mrf.mxu0 }
  0xe6   :  { %v142_v30 = vsel %vm140_vm1, %v135_v26, %v141_v28 }
  0xe7   :  { %v458_v31 = vpop.f32.mrf.mxu0  ;;  %v143_v32 = vpack.c.bf16 %v142_v30, %v142_v30 }
  0xe9   :  { %476 = vmatmul.mubr.bf16.vlgmr.msra.gmra.mxu1 %v143_v32 }
 0x1a9   :  { %v249_v36 = vpop.f32.mrf.mxu1 }
 0x1aa   :  { %v250_v37 = vadd.f32 %v394_v35, %v249_v36 }
 0x1ab   :  { %v477_v38 = vpop.f32.mrf.mxu1 }
 0x1ac   :  { %vm255_vm2 = vcmp.gt.f32.partialorder %v250_v37, 0.0  ;;  %v256_v39 = vmul.f32 0.01, %v250_v37 }
 0x1ad   :  { %v252_v40 = vpop.f32.mrf.mxu1 }
 0x1ae   :  { %v257_v41 = vsel %vm255_vm2, %v250_v37, %v256_v39 }
 0x1af   :  { %v258_v42 = vpack.c.bf16 %v257_v41, %v257_v41  ;;  %v478_v43 = vpop.f32.mrf.mxu1 }
 0x1b1   :  { %496 = vmatmul.mubr.bf16.vlgmr.msra.gmra.mxu0 %v258_v42 }
 0x271   :  { %v364_v45 = vpop.f32.mrf.mxu0 }
 0x272   :  { %v365_v46 = vadd.f32 %v403_v44, %v364_v45 }
 0x273   :  { %v497_v47 = vpop.f32.mrf.mxu0 }
 0x274   :  { %370 = vst [vmem:[#allocation2] sm:$0xff] %v365_v46 }
 0x275   :  { %v367_v48 = vpop.f32.mrf.mxu0 }
 0x276   :  { %537 = shalt.err (!%p534_p4)
}
 0x277   :  { %380 = dma.vmem_to_hbm [thread:$0]  %s378_s30, 128, %s715_s7, [#allocation3]   ;;  %v498_v49 = vpop.f32.mrf.mxu0 }
 0x278   :  { %546 = dma.done.wait [#allocation3], 128  }
 0x279   :  { %547 = vsyncadd [#allocation3], 4294967168 }
 0x27a   :  { %384 = vsyncpa [#allocation3], 1 }

</bundles_post_ra>
